<compile_context>
chip_gen: v6e
topology: v6e:2x2x1
jax: 0.10.0
libtpu: 0.0.40
codegen_flags: <defaults>
</compile_context>

<pallas_src>
import functools

import jax
import jax.numpy as jnp
from jax.experimental import pallas as pl
from jax.experimental.pallas import tpu as pltpu


def _layernorm_kernel(x_ref, gamma_ref, beta_ref, o_ref, *, eps, d_model):
    # x_ref: (tm, D) tile; gamma/beta: (1, D); o_ref: (tm, D)
    x = x_ref[...].astype(jnp.float32)

    # Two-pass statistics (numerically robust for large-mean inputs).
    mean = jnp.mean(x, axis=-1, keepdims=True)
    centered = x - mean

    # Unbiased std (ddof=1), same as torch.std default.
    var = jnp.sum(centered * centered, axis=-1, keepdims=True) * (1.0 / (d_model - 1))
    std = jnp.sqrt(var)

    # Per-row reciprocal ((tm,1), exact) then elementwise multiply: avoids a
    # full-tile (tm, D) divide.
    inv = pl.reciprocal(std + eps, approx=False)
    out = centered * inv
    out = gamma_ref[...].astype(jnp.float32) * out + beta_ref[...].astype(jnp.float32)
    o_ref[...] = out.astype(o_ref.dtype)


def _round_up(n, m):
    return ((n + m - 1) // m) * m


def _physical_vmem_bytes():
    try:
        return int(pltpu.get_tpu_info().vmem_capacity_bytes)
    except Exception:
        return 128 << 20  # v5e/v6e default if the query is unavailable


def layer_norm(x, gamma, beta, eps=1e-12):
    """x: (..., d_model). gamma, beta: (d_model,). Returns same shape/dtype as x."""
    orig_shape = x.shape
    d_model = orig_shape[-1]
    assert d_model > 1, "unbiased std (ddof=1) is undefined for d_model == 1"

    rows = 1
    for s in orig_shape[:-1]:
        rows *= s

    x2 = x.reshape(rows, d_model)
    gamma2 = gamma.reshape(1, d_model)
    beta2 = beta.reshape(1, d_model)

    itemsize = jnp.dtype(x.dtype).itemsize
    # Sublane alignment: 8 rows for 32-bit dtypes, 16 for bf16/f16, 32 for int8/fp8.
    row_align = max(8, 32 // max(itemsize, 1))

    # --- Generation-aware tile / VMEM sizing --------------------------------
    vmem_cap = _physical_vmem_bytes()           # 128 MiB (v5e/v6e) or 64 MiB (v7x)
    small_vmem = vmem_cap <= (64 << 20)
    # Measured: ~1-4 MiB tiles already hit 85-86% of HBM roofline; use smaller
    # tiles on v7x to preserve headroom in its 64 MiB VMEM.
    target_tile_bytes = (2 << 20) if small_vmem else (4 << 20)
    vmem_budget = vmem_cap // 2                 # cap for vmem_limit_bytes

    row_hbm_bytes = max(d_model * itemsize, 1)
    # Full per-row VMEM cost: double-buffered in + out pipeline buffers (input
    # dtype) plus ~3 f32 temporaries inside the kernel (x32, centered, out32).
    row_vmem_bytes = 4 * d_model * itemsize + 3 * d_model * 4

    tm_hbm = target_tile_bytes // row_hbm_bytes
    tm_vmem = max((vmem_budget - (4 << 20)) // row_vmem_bytes, row_align)
    tm = min(tm_hbm, tm_vmem, 2048)
    tm = max(row_align, (tm // row_align) * row_align)

    rows_aligned = _round_up(rows, row_align)
    # Guarantee >= 2 grid steps whenever rows allow, so the "parallel" axis can
    # shard across both TensorCores on v7x (no effect on single-TC v5e/v6e).
    if rows_aligned >= 2 * row_align:
        half = _round_up((rows_aligned + 1) // 2, row_align)
        tm = min(tm, half)
    tm = min(tm, rows_aligned)
    tm = max(tm, row_align)

    # No padding / output slice: the grid covers rows with a (possibly partial)
    # last block. LayerNorm is strictly per-row, so overhang garbage cannot
    # contaminate valid rows, and overhang writes are dropped by Pallas.
    grid = (pl.cdiv(rows, tm),)

    tile_in_bytes = tm * d_model * itemsize
    tile_f32_bytes = tm * d_model * 4
    needed = 4 * tile_in_bytes + 3 * tile_f32_bytes + 4 * d_model * 4 + (2 << 20)
    vmem_limit = int(min(max(needed, 4 << 20), vmem_budget))

    cost = pl.CostEstimate(
        flops=8 * rows * d_model,
        transcendentals=2 * rows,  # sqrt + reciprocal per row
        bytes_accessed=2 * rows * d_model * itemsize + 2 * d_model * 4,
    )

    kernel = functools.partial(_layernorm_kernel, eps=eps, d_model=d_model)

    out2 = pl.pallas_call(
        kernel,
        out_shape=jax.ShapeDtypeStruct((rows, d_model), x.dtype),
        grid_spec=pltpu.PrefetchScalarGridSpec(
            num_scalar_prefetch=0,
            grid=grid,
            in_specs=[
                pl.BlockSpec((tm, d_model), lambda i: (i, 0)),
                pl.BlockSpec((1, d_model), lambda i: (0, 0)),
                pl.BlockSpec((1, d_model), lambda i: (0, 0)),
            ],
            out_specs=pl.BlockSpec((tm, d_model), lambda i: (i, 0)),
        ),
        compiler_params=pltpu.CompilerParams(
            dimension_semantics=("parallel",),
            vmem_limit_bytes=vmem_limit,
        ),
        cost_estimate=cost,
    )(x2, gamma2, beta2)

    return out2.reshape(orig_shape)


def _reference_layer_norm(x, gamma, beta, eps=1e-12):
    x32 = x.astype(jnp.float32)
    mean = jnp.mean(x32, axis=-1, keepdims=True)
    var = jnp.var(x32, axis=-1, keepdims=True, ddof=1)  # unbiased, like torch.std
    std = jnp.sqrt(var)
    out = (x32 - mean) / (std + eps)
    return (gamma * out + beta).astype(x.dtype)


if __name__ == "__main__":
    key = jax.random.PRNGKey(0)
    eps = 1e-12

    # Test 1: lane-dense, evenly tiled (batch=2, seq=8, d_model=128).
    d_model = 128
    gamma = jnp.ones((d_model,), dtype=jnp.float32)   # nn.Parameter(torch.ones(d_model))
    beta = jnp.zeros((d_model,), dtype=jnp.float32)   # nn.Parameter(torch.zeros(d_model))

    k1, k2 = jax.random.split(key)
    x = jax.random.normal(k1, (2, 8, d_model), dtype=jnp.float32)
    out = jax.block_until_ready(layer_norm(x, gamma, beta, eps=eps))
    ref = _reference_layer_norm(x, gamma, beta, eps=eps)
    assert out.shape == x.shape and out.dtype == x.dtype
    assert jnp.allclose(out, ref, atol=1e-5, rtol=1e-5), "mismatch vs reference (even)"

    # Test 2: ragged row count (exercises the partial last block, no padding).
    x_ragged = jax.random.normal(k2, (3, 7, d_model), dtype=jnp.float32)
    out_r = jax.block_until_ready(layer_norm(x_ragged, gamma, beta, eps=eps))
    ref_r = _reference_layer_norm(x_ragged, gamma, beta, eps=eps)
    assert out_r.shape == x_ragged.shape and out_r.dtype == x_ragged.dtype
    assert jnp.allclose(out_r, ref_r, atol=1e-5, rtol=1e-5), "mismatch vs reference (ragged)"

    print("KERNEL_OK")
</pallas_src>

<mosaic_0001>
module attributes {stable_mosaic.version = 11 : i64} {
  func.func @_layernorm_kernel(%arg0: i32, %arg1: memref<8x128xf32, #tpu.memory_space<vmem>>, %arg2: memref<1x128xf32, #tpu.memory_space<vmem>>, %arg3: memref<1x128xf32, #tpu.memory_space<vmem>>, %arg4: memref<8x128xf32, #tpu.memory_space<vmem>>) attributes {dimension_semantics = [#tpu.dimension_semantics<parallel>], iteration_bounds = array<i64: 2>, scalar_prefetch = 0 : i64, scratch_operands = 0 : i64, tpu.core_type = #tpu.core_type<tc>, window_params = [{transform_indices = @transform_0, window_bounds = array<i64: 8, 128>}, {pipeline_mode = #tpu.pipeline_mode<synchronous>, transform_indices = @transform_1, window_bounds = array<i64: 1, 128>}, {pipeline_mode = #tpu.pipeline_mode<synchronous>, transform_indices = @transform_2, window_bounds = array<i64: 1, 128>}, {transform_indices = @transform_3, window_bounds = array<i64: 8, 128>}]} {
    %c0 = arith.constant 0 : index
    %c0_0 = arith.constant 0 : index
    %0 = vector.load %arg1[%c0, %c0_0] : memref<8x128xf32, #tpu.memory_space<vmem>>, vector<8x128xf32>
    %cst = arith.constant dense<0.000000e+00> : vector<8xf32>
    %1 = vector.multi_reduction <add>, %0, %cst [1] : vector<8x128xf32> to vector<8xf32>
    %2 = vector.shape_cast %1 : vector<8xf32> to vector<8x1xf32>
    %cst_1 = arith.constant 1.280000e+02 : f32
    %3 = vector.broadcast %cst_1 : f32 to vector<8x1xf32>
    %4 = arith.divf %2, %3 : vector<8x1xf32>
    %5 = vector.broadcast %4 : vector<8x1xf32> to vector<8x128xf32>
    %6 = arith.subf %0, %5 : vector<8x128xf32>
    %7 = arith.mulf %6, %6 : vector<8x128xf32>
    %cst_2 = arith.constant dense<0.000000e+00> : vector<8xf32>
    %8 = vector.multi_reduction <add>, %7, %cst_2 [1] : vector<8x128xf32> to vector<8xf32>
    %9 = vector.shape_cast %8 : vector<8xf32> to vector<8x1xf32>
    %cst_3 = arith.constant 0.00787401571 : f32
    %10 = vector.broadcast %cst_3 : f32 to vector<8x1xf32>
    %11 = arith.mulf %9, %10 : vector<8x1xf32>
    %12 = math.sqrt %11 : vector<8x1xf32>
    %cst_4 = arith.constant 9.99999996E-13 : f32
    %13 = vector.broadcast %cst_4 : f32 to vector<8x1xf32>
    %14 = arith.addf %12, %13 : vector<8x1xf32>
    %15 = tpu.reciprocal %14 : vector<8x1xf32> -> vector<8x1xf32>
    %16 = vector.broadcast %15 : vector<8x1xf32> to vector<8x128xf32>
    %17 = arith.mulf %6, %16 : vector<8x128xf32>
    %c0_5 = arith.constant 0 : index
    %c0_6 = arith.constant 0 : index
    %18 = vector.load %arg2[%c0_5, %c0_6] : memref<1x128xf32, #tpu.memory_space<vmem>>, vector<1x128xf32>
    %19 = vector.broadcast %18 : vector<1x128xf32> to vector<8x128xf32>
    %20 = arith.mulf %19, %17 : vector<8x128xf32>
    %c0_7 = arith.constant 0 : index
    %c0_8 = arith.constant 0 : index
    %21 = vector.load %arg3[%c0_7, %c0_8] : memref<1x128xf32, #tpu.memory_space<vmem>>, vector<1x128xf32>
    %22 = vector.broadcast %21 : vector<1x128xf32> to vector<8x128xf32>
    %23 = arith.addf %20, %22 : vector<8x128xf32>
    %c0_9 = arith.constant 0 : index
    %c0_10 = arith.constant 0 : index
    %24 = vector.load %arg4[%c0_9, %c0_10] : memref<8x128xf32, #tpu.memory_space<vmem>>, vector<8x128xf32>
    tpu.vector_store %arg4[%c0_9, %c0_10], %23 {strides = array<i32>} : memref<8x128xf32, #tpu.memory_space<vmem>>, vector<8x128xf32>,
    return
  }
  func.func @transform_0(%arg0: i32) -> (i32, i32) {
    %c0_i32 = arith.constant 0 : i32
    %c0_i32_0 = arith.constant 0 : i32
    return %arg0, %c0_i32 : i32, i32
  }
  func.func @transform_1(%arg0: i32) -> (i32, i32) {
    %c0_i32 = arith.constant 0 : i32
    %c0_i32_0 = arith.constant 0 : i32
    %c0_i32_1 = arith.constant 0 : i32
    return %c0_i32, %c0_i32_0 : i32, i32
  }
  func.func @transform_2(%arg0: i32) -> (i32, i32) {
    %c0_i32 = arith.constant 0 : i32
    %c0_i32_0 = arith.constant 0 : i32
    %c0_i32_1 = arith.constant 0 : i32
    return %c0_i32, %c0_i32_0 : i32, i32
  }
  func.func @transform_3(%arg0: i32) -> (i32, i32) {
    %c0_i32 = arith.constant 0 : i32
    %c0_i32_0 = arith.constant 0 : i32
    return %arg0, %c0_i32 : i32, i32
  }
}

</mosaic_0001>

<bundles_post_ra>
// kernel: tpu_custom_call.1
= control target key start
LH: loop header
LB: loop body
LE: loop exit
PB: predicated region body
PF: predicated region fallthrough
CT: control target
= control target key end

     0   :  { %8 = vsyncpa [#allocation3], 0  ;;  %s634_s0 = inlined_call_operand.hbm [shape: f32[16,128], index: 0, kind: input, shape index: {}]   ;;  %s635_s1 = inlined_call_operand.vmem [shape: f32[1,128], index: 1, kind: input, shape index: {}]   ;;  %s636_s2 = inlined_call_operand.vmem [shape: f32[1,128], index: 2, kind: input, shape index: {}]   ;;  %s637_s3 = inlined_call_operand.hbm [shape: f32[16,128], index: 3, kind: output, shape index: {}]  }
   0x1   :  { %10 = vsyncpa [#allocation3 + $0x1], 0 }
   0x2   :  { %11 = vsyncpa [#allocation4], 0 }
   0x3   :  { %13 = vsyncpa [#allocation4 + $0x1], 0  ;;  %s487_s12 = smov 0   ;;  %s489_s13 = smov 0  }
   0x4   :  { %s491_s14 = smov 0   ;;  %s493_s15 = smov 0  }
   0x5 LB: > { %s508_s16 = sadd.s32 4294967295, %s463_s15   ;;  %s307_s17 = sadd.s32 4294967294, %s463_s15   ;;  %s463_s15 = sphi %s493_s15, %s654_s15   ;;  %s459_s14 = sphi %s491_s14, %s653_s14   ;;  %s455_s13 = sphi %s489_s13, %s652_s13   ;;  %s451_s12 = sphi %s487_s12, %s651_s12  }
   0x6   : > { %s512_s18 = sadd.s32 1, %s463_s15   ;;  %s26_s19 = sadd.s32 1, %s459_s14 }
   0x7   : > { %s23_s20 = ssub.s32 %s463_s15, %s512_s18  ;;  %p33_p0 = scmp.ne.s32.totalorder %s459_s14, %s455_s13 }
   0x8   : > { %p24_p1 = scmp.eq.s32.totalorder %s23_s20, 0  ;;  %p34_p2 = scmp.eq.s32.totalorder %s463_s15, 0 }
   0x9   : > { %p39_p3 = scmp.ne.s32.totalorder %s455_s13, %s451_s12  ;;  %p40_p4 = scmp.eq.s32.totalorder %s508_s16, 0 }
   0xa   : > { %s524_s21 = scalar_select %p24_p1, %s459_s14, %s26_s19  }
   0xb   : > { %p526_p5 = por %p34_p2, %p33_p0  ;;  %p530_p6 = por %p40_p4, %p39_p3 }
   0xc   : > { %p105_p7 = scmp.eq.s32.totalorder %s508_s16, 1  ;;  %p111_p8 = scmp.eq.s32.totalorder %s307_s17, 1 }
   0xd   : > { %s641_s23 = scalar_select %p530_p6, 1, 0 }
   0xe   : > { %p333_p10 = scmp.lt.s32.totalorder %s463_s15, 2  ;;  %p537_p11 = por %p105_p7, %p33_p0 }
   0xf   : > { %p541_p12 = por %p111_p8, %p39_p3  ;;  %s137_s26 = sand.u32 1, %s459_s14  }
  0x10   : > { %s642_s24 = scalar_select %p537_p11, 1, 0 }
  0x11   : > { %s643_s25 = scalar_select %p541_p12, 1, 0 }
  0x12   : > { %s311_s27 = sshll.u32 %s463_s15, 7  ;;  %s310_s28 = sshll.u32 %s137_s26, 3 }
  0x13   : > { %s550_s4 = scalar_lea.hbm %s634_s0, %s311_s27  ;;  %s141_s5 = scalar_lea.vmem [#allocation2], %s310_s28 }
  0x14   : > { %s148_s6 = sshll.u32 %s141_s5, 4  ;;  %p554_p13 = pnand %p333_p10, %p526_p5  ;;  %s558_s6 = int_to_ptr.vmem [resolvable:$true] %s148_s6 }
  0x15   : > { %s138_s8 = scalar_lea.sflag [#allocation3], %s137_s26  ;;  %s371_s9 = scalar_lea.hbm %s550_s4, 128 }
  0x16   : > { %p372_p2 = scmp.ne.s32.totalorder %s550_s4, %s371_s9  ;;  %p373_p3 = pneg %p554_p13 }
  0x17   : > { %s376_s17 = scalar_lea.hbm %s634_s0, 256  ;;  %p377_p5 = scmp.lt.s32.totalorder %s550_s4, %s634_s0 }
  0x18   : > { %p374_p4 = pnand %p373_p3, %p372_p2  ;;  %p378_p8 = scmp.lt.s32.totalorder %s376_s17, %s371_s9 }
  0x1a   : > { %p375_p7 = pneg %p374_p4  ;;  %p379_p10 = por %p378_p8, %p377_p5 }
  0x1c   : > { %p380_p9 = pnand %p379_p10, %p375_p7 }
  0x1e   : > { %383 = shalt.err (!%p380_p9)
}
  0x1f   : > { %s384_s22 = scalar_lea.vmem %s558_s6, 128  ;;  %s465_s26 = smov [#allocation2]  }
  0x20   : > { %p385_p0 = scmp.ne.s32.totalorder %s558_s6, %s384_s22  ;;  %s389_s27 = sshll.u32 %s465_s26, 4  ;;  %s390_s27 = int_to_ptr.vmem [resolvable:$false] %s389_s27 }
  0x21   : > { %s391_s28 = scalar_lea.vmem %s390_s27, 256  ;;  %p392_p4 = scmp.lt.s32.totalorder %s558_s6, %s390_s27 }
  0x22   : > { %p387_p1 = pnand %p385_p0, %p373_p3  ;;  %p393_p12 = scmp.lt.s32.totalorder %s391_s28, %s384_s22 }
  0x24   : > { %p388_p2 = pneg %p387_p1  ;;  %p394_p11 = por %p393_p12, %p392_p4 }
  0x26   : > { %p395_p6 = pnand %p394_p11, %p388_p2 }
  0x28   : > { %398 = shalt.err (!%p395_p6)
}
  0x29   : > { %328 = dma.hbm_to_vmem [thread:$0]  (!%p554_p13), %s550_s4, 128, %s558_s6, %s138_s8  }
  0x2a   : > { %p645_p9 = scmp.lt.s32.totalorder %s463_s15, 3  ;;  %p646_p7 = scmp.ge.s32.totalorder %s463_s15, 1 }
  0x2c   : > { %p154_p0 = pnand %p646_p7, %p645_p9 }
  0x2d   : > { %s585_s29 = sand.u32 (!%p154_p0), 1, %s455_s13   ;;  %p647_p6 = scmp.ne.s32.totalorder (!%p154_p0), %s641_s23, 0 }
  0x2e   : > { %157 = sbr.rel (%p154_p0) target bundleno = 390 (0x186), region = 32  ;;  %s313_s30 = sshll.u32 (!%p154_p0), %s585_s29, 3 }
  0x2f   : > { %s160_s5 = scalar_lea.sflag (!%p154_p0), [#allocation3], %s585_s29  ;;  %s163_s9 = scalar_lea.vmem (!%p154_p0), [#allocation2], %s313_s30 }
  0x33   : > { %442 = dma.done.wait (%p647_p6), %s160_s5, 128  }
  0x34   : > { %444 = vsyncadd (%p647_p6), %s160_s5, 4294967168  ;;  %v186_v0 = vld [vmem:[%s163_s9] sm:$0xff]  ;;  %s318_s8 = sshll.u32 %s508_s16, 7  ;;  %s185_s10 = scalar_lea.vmem [#allocation5], %s313_s30 }
  0x35   : > { %187 = vadd.xlane.f32.xlu0 %v186_v0  ;;  %v315_v14 = vld [vmem:[%s635_s1] ss:$0 sm:$0xff]  ;;  %s237_s11 = sshll.u32 %s185_s10, 4  ;;  %s235_s20 = scalar_lea.hbm %s637_s3, %s318_s8  ;;  %s238_s11 = int_to_ptr.vmem [resolvable:$true] %s237_s11 }
  0x36   : > { %v316_v16 = vld [vmem:[%s636_s2] ss:$0 sm:$0xff]  ;;  %s224_s22 = scalar_lea.sflag [#allocation4], %s585_s29  ;;  %s399_s26 = scalar_lea.vmem %s238_s11, 128 }
  0x37   : > { %p400_p11 = scmp.ne.s32.totalorder %s238_s11, %s399_s26  ;;  %p648_p12 = scmp.ne.s32.totalorder %s642_s24, 0 }
  0x38   : > { %s466_s27 = smov [#allocation5]  }
  0x39   : > { %p401_p13 = pnand %p400_p11, %p648_p12  ;;  %s403_s28 = sshll.u32 %s466_s27, 4  ;;  %s404_s28 = int_to_ptr.vmem [resolvable:$false] %s403_s28 }
  0x3a   : > { %s405_s16 = scalar_lea.vmem %s404_s28, 256  ;;  %p406_p3 = scmp.lt.s32.totalorder %s238_s11, %s404_s28 }
  0x3b   : > { %p402_p1 = pneg %p401_p13  ;;  %p407_p5 = scmp.lt.s32.totalorder %s405_s16, %s399_s26 }
  0x3d   : > { %p408_p8 = por %p407_p5, %p406_p3 }
  0x3f   : > { %p409_p10 = pnand %p408_p8, %p402_p1 }
  0xbe   : > { %v188_v1 = vpop.xlane.xlu0 %187 }
  0xbf   : > { %v190_v2 = vmul.f32 0.0078125, %v188_v1 }
  0xc1   : > { %v191_v3 = vsub.f32 %v186_v0, %v190_v2 }
  0xc3   : > { %v192_v4 = vmul.f32 %v191_v3, %v191_v3 }
  0xc5   : > { %193 = vadd.xlane.f32.xlu0 %v192_v4 }
 0x14e   : > { %v194_v5 = vpop.xlane.xlu0 %193 }
 0x14f   : > { %v195_v6 = vmul.f32 0.007874016, %v194_v5 }
 0x151   : > { %367 = vrsqrt.f32 %v195_v6  ;;  %vm198_vm0 = vcmp.eq.f32.partialorder %v195_v6, inf  ;;  %v201_v9 = vand.u32 2147483648, %v195_v6  ;;  %vm200_vm1 = vcmp.eq.f32.partialorder %v195_v6, 0.0 }
 0x15e   : > { %v368_v7 = vpop.eup %367 }
 0x15f   : > { %v197_v8 = vmul.f32 %v368_v7, %v195_v6 }
 0x161   : > { %v199_v10 = vsel %vm198_vm0, %v195_v6, %v197_v8 }
 0x162   : > { %v202_v11 = vsel %vm200_vm1, %v201_v9, %v199_v10 }
 0x163   : > { %v203_v12 = vadd.f32 1e-12, %v202_v11 }
 0x165   : > { %369 = vrcp.f32 %v203_v12 }
 0x172   : > { %v370_v13 = vpop.eup %369 }
 0x173   : > { %v205_v15 = vmul.f32 %v370_v13, %v191_v3 }
 0x175   : > { %v213_v17 = vmul.f32 %v315_v14, %v205_v15 }
 0x177   : > { %v221_v18 = vadd.f32 %v316_v16, %v213_v17 }
 0x179   : > { %222 = vst [vmem:[%s185_s10] sm:$0xff] %v221_v18 }
 0x17a   : > { %412 = shalt.err (!%p409_p10)
}
 0x17b   : > { %s413_s30 = scalar_lea.hbm %s235_s20, 128  ;;  %s417_s9 = scalar_lea.hbm %s637_s3, 256 }
 0x17c   : > { %p414_p2 = scmp.ne.s32.totalorder %s235_s20, %s413_s30  ;;  %p418_p7 = scmp.lt.s32.totalorder %s235_s20, %s637_s3 }
 0x17d   : > { %p419_p0 = scmp.lt.s32.totalorder %s417_s9, %s413_s30 }
 0x17e   : > { %p415_p4 = pnand %p414_p2, %p648_p12 }
 0x17f   : > { %p420_p6 = por %p419_p0, %p418_p7 }
 0x180   : > { %p416_p9 = pneg %p415_p4 }
 0x182   : > { %p421_p11 = pnand %p420_p6, %p416_p9 }
 0x184   : > { %424 = shalt.err (!%p421_p11)
}
 0x185   : > { %323 = dma.vmem_to_hbm [thread:$0]  (%p648_p12), %s238_s11, 128, %s235_s20, %s224_s22  }
 0x186 PF: > { %s249_s6 = sand.u32 1, %s451_s12   ;;  %p649_p13 = scmp.ne.s32.totalorder %s643_s25, 0 }
 0x187   : > { %p650_p1 = scmp.ge.s32.totalorder %s463_s15, 2  ;;  %s250_s7 = scalar_lea.sflag [#allocation4], %s249_s6 }
 0x189   : > { %p330_p3 = pnand %p650_p1, %p649_p13 }
 0x18b   : > { %p331_p5 = pneg %p330_p3 }
 0x18d   : > { %446 = dma.done.wait (%p331_p5), %s250_s7, 128  }
 0x18e   : > { %448 = vsyncadd (%p331_p5), %s250_s7, 4294967168  ;;  %p16_p8 = scmp.ge.s32.totalorder %s512_s18, 4   ;;  %s651_s12 = smov %s455_s13 }
 0x18f   : > { %s652_s13 = smov %s459_s14  ;;  %s653_s14 = smov %s524_s21 }
 0x190   : > { %s654_s15 = smov %s512_s18  ;;  %18 = sbr.rel (!%p16_p8) target bundleno = 5 (0x5), region = 77 }
 0x195   :  { %255 = vsyncpa [#allocation3], 1 }
 0x196   :  { %257 = vsyncpa [#allocation3 + $0x1], 1 }
 0x197   :  { %258 = vsyncpa [#allocation4], 1 }
 0x198   :  { %260 = vsyncpa [#allocation4 + $0x1], 1 }

</bundles_post_ra>
